<compile_context>
chip_gen: v5e
topology: v5e:2x2
jax: 0.10.0
libtpu: 0.0.40
codegen_flags: <defaults>
</compile_context>

<pallas_src>
import jax
import jax.numpy as jnp
from jax.experimental import pallas as pl
from jax.experimental.pallas import tpu as pltpu


# -----------------------------------------------------------------------------
# Fused kernel: SingleConv + BasicBlock (3x 3x3 conv, folded BN, residual, ReLU)
# -----------------------------------------------------------------------------
def _down_fused_kernel(x_ref, B1_ref, b1_ref, B2_ref, b2_ref, B3_ref, b3_ref,
                       o_ref, xpad, y1pad, y2pad):
    Hp = o_ref.shape[1]

    # Zero-bordered padded activations: rows 0 and Hp+1 stay zero => 'same'
    # padding along H.  Padding along W is baked into the banded weights.
    xpad[...] = jnp.zeros_like(xpad)
    y1pad[...] = jnp.zeros_like(y1pad)
    y2pad[...] = jnp.zeros_like(y2pad)
    xpad[pl.ds(1, Hp), :] = x_ref[0]

    def conv3x3(src_pad, B_ref, b_ref):
        # One MXU matmul per kernel row dy; the dx taps and the W zero-padding
        # live in the K dimension of the banded weight B_ref[dy]
        # (K = W*Cin, N = W*Cout -> lane-dense accumulator).
        acc = jnp.zeros((Hp, B_ref.shape[-1]), jnp.float32)
        for dy in range(3):
            acc = acc + jnp.dot(src_pad[pl.ds(dy, Hp), :], B_ref[dy],
                                preferred_element_type=jnp.float32)
        return acc + b_ref[...]          # folded-BN bias (scale is in B)

    # SingleConv: conv + BN + ReLU
    y1 = jnp.maximum(conv3x3(xpad, B1_ref, b1_ref), 0.0)
    y1pad[pl.ds(1, Hp), :] = y1
    # BasicBlock.conv_block1: conv + BN + ReLU
    y2 = jnp.maximum(conv3x3(y1pad, B2_ref, b2_ref), 0.0)
    y2pad[pl.ds(1, Hp), :] = y2
    # BasicBlock.conv_block2: conv + BN, then identity residual (y1) + ReLU
    out = jnp.maximum(conv3x3(y2pad, B3_ref, b3_ref) + y1, 0.0)

    o_ref[0] = out.astype(o_ref.dtype)


# -----------------------------------------------------------------------------
# Parameter folding: BN scale into banded conv weights, bias into a lane row
# -----------------------------------------------------------------------------
def _fold_bn(conv_bias, gamma, beta, mean, var, eps=1e-5):
    s = gamma / jnp.sqrt(var + eps)
    b = beta + (conv_bias - mean) * s
    return s, b


def _banded_weight(w_hwio, scale, Wp):
    """Fold the BN scale into w and build, per kernel row dy, a banded matrix
    B[dy] of shape (Wp*Cin, Wp*Cout) so that for an input row x (channels
    fastest along the lane dim), x @ B[dy] is the dy-row contribution of a 3x3
    'same' conv for all Wp output positions (W zero-padding is implicit)."""
    KH, KW, Cin, Cout = w_hwio.shape
    wf = w_hwio.astype(jnp.float32) * scale.reshape(1, 1, 1, Cout)
    # shift[dx, src, w] = 1  iff  src == w + dx - 1 (in range)
    shift = jnp.stack(
        [jnp.eye(Wp, Wp, k=1 - dx, dtype=jnp.float32) for dx in range(KW)])
    # B[dy, src*Cin+ci, w*Cout+co] = sum_dx shift[dx,src,w] * wf[dy,dx,ci,co]
    B = jnp.einsum("xsw,yxio->ysiwo", shift, wf)
    return B.reshape(KH, Wp * Cin, Wp * Cout)


def fold_down_params(p, Wp):
    """Fold BN + conv bias into banded weights / bias rows for the kernel."""
    Cout = p["w_sc"].shape[-1]
    fp = {}
    for name, w_key, b_key, bn_key in (("1", "w_sc", "b_sc", "bn_sc"),
                                       ("2", "w_b1", "b_b1", "bn_b1"),
                                       ("3", "w_b2", "b_b2", "bn_b2")):
        s, b = _fold_bn(p[b_key], *p[bn_key])
        fp["B" + name] = _banded_weight(p[w_key], s, Wp)
        fp["b" + name] = jnp.tile(b.astype(jnp.float32), Wp).reshape(1, Wp * Cout)
    return fp


# -----------------------------------------------------------------------------
# Down forward (NCHW in / NCHW out)
# -----------------------------------------------------------------------------
def down_forward(x_nchw, fp):
    N, Cin, H, W = x_nchw.shape
    Hp, Wp = H // 2, W // 2
    Cout = fp["b1"].shape[1] // Wp

    # MaxPool2d(2): cheap reshape+max in XLA (see TODO at top of file).
    xh = jnp.transpose(x_nchw, (0, 2, 3, 1))                 # NHWC
    xp = xh.reshape(N, Hp, 2, Wp, 2, Cin).max(axis=(2, 4))   # (N, Hp, Wp, Cin)
    xp = xp.reshape(N, Hp, Wp * Cin)                         # lane dim = W*Cin

    assert fp["B1"].shape == (3, Wp * Cin, Wp * Cout), fp["B1"].shape

    out = pl.pallas_call(
        _down_fused_kernel,
        out_shape=jax.ShapeDtypeStruct((N, Hp, Wp * Cout), x_nchw.dtype),
        grid_spec=pltpu.PrefetchScalarGridSpec(
            num_scalar_prefetch=0,
            grid=(N,),
            in_specs=[
                pl.BlockSpec((1, Hp, Wp * Cin), lambda n: (n, 0, 0)),
                pl.BlockSpec((3, Wp * Cin, Wp * Cout), lambda n: (0, 0, 0)),
                pl.BlockSpec((1, Wp * Cout), lambda n: (0, 0)),
                pl.BlockSpec((3, Wp * Cout, Wp * Cout), lambda n: (0, 0, 0)),
                pl.BlockSpec((1, Wp * Cout), lambda n: (0, 0)),
                pl.BlockSpec((3, Wp * Cout, Wp * Cout), lambda n: (0, 0, 0)),
                pl.BlockSpec((1, Wp * Cout), lambda n: (0, 0)),
            ],
            out_specs=pl.BlockSpec((1, Hp, Wp * Cout), lambda n: (n, 0, 0)),
            scratch_shapes=[
                pltpu.VMEM((Hp + 2, Wp * Cin), jnp.float32),   # padded pooled x
                pltpu.VMEM((Hp + 2, Wp * Cout), jnp.float32),  # padded y1
                pltpu.VMEM((Hp + 2, Wp * Cout), jnp.float32),  # padded y2
            ],
        ),
        compiler_params=pltpu.CompilerParams(
            dimension_semantics=("parallel",)),
    )(xp, fp["B1"], fp["b1"], fp["B2"], fp["b2"], fp["B3"], fp["b3"])

    out = out.reshape(N, Hp, Wp, Cout)
    return jnp.transpose(out, (0, 3, 1, 2))                  # NHWC -> NCHW


# -----------------------------------------------------------------------------
# Deterministic synthetic parameters
# -----------------------------------------------------------------------------
def make_down_params(key, in_channels, out_channels):
    ks = jax.random.split(key, 6)

    def conv_w(k, cin, cout):
        fan_in = cin * 9
        return jax.random.normal(k, (3, 3, cin, cout), jnp.float32) * fan_in ** -0.5

    def conv_b(k, cout):
        return jax.random.normal(k, (cout,), jnp.float32) * 0.05

    def bn(cout, off):
        i = jnp.arange(cout, dtype=jnp.float32)
        return (1.0 + 0.1 * jnp.cos(i + off), 0.05 * jnp.sin(i + off),
                0.01 * i, 1.0 + 0.02 * i)

    return {
        # SingleConv: Conv3x3(in->out) + BN + ReLU
        "w_sc": conv_w(ks[0], in_channels, out_channels),
        "b_sc": conv_b(ks[1], out_channels), "bn_sc": bn(out_channels, 0.0),
        # BasicBlock.conv_block1: Conv3x3(out->out) + BN + ReLU
        "w_b1": conv_w(ks[2], out_channels, out_channels),
        "b_b1": conv_b(ks[3], out_channels), "bn_b1": bn(out_channels, 1.0),
        # BasicBlock.conv_block2: Conv3x3(out->out) + BN (ReLU after residual)
        "w_b2": conv_w(ks[4], out_channels, out_channels),
        "b_b2": conv_b(ks[5], out_channels), "bn_b2": bn(out_channels, 2.0),
    }


# -----------------------------------------------------------------------------
# Pure-JAX reference (for correctness check)
# -----------------------------------------------------------------------------
def _ref_conv_bn(x, w, b, bn, residual=None, relu=True, eps=1e-5):
    gamma, beta, mean, var = bn
    y = jax.lax.conv_general_dilated(
        x, w, window_strides=(1, 1), padding="SAME",
        dimension_numbers=("NHWC", "HWIO", "NHWC"),
        precision=jax.lax.Precision.HIGHEST)
    y = (y + b - mean) * (gamma / jnp.sqrt(var + eps)) + beta
    if residual is not None:
        y = y + residual
    if relu:
        y = jnp.maximum(y, 0.0)
    return y


def down_reference(x_nchw, p):
    N, C, H, W = x_nchw.shape
    xp = x_nchw.reshape(N, C, H // 2, 2, W // 2, 2).max(axis=(3, 5))
    x = jnp.transpose(xp, (0, 2, 3, 1))                      # NHWC
    y1 = _ref_conv_bn(x, p["w_sc"], p["b_sc"], p["bn_sc"])
    y2 = _ref_conv_bn(y1, p["w_b1"], p["b_b1"], p["bn_b1"])
    out = _ref_conv_bn(y2, p["w_b2"], p["b_b2"], p["bn_b2"], residual=y1)
    return jnp.transpose(out, (0, 3, 1, 2))


if __name__ == "__main__":
    key = jax.random.PRNGKey(0)
    k_x, k_p = jax.random.split(key)

    N, Cin, Cout, H, W = 2, 4, 8, 16, 16
    x = jax.random.normal(k_x, (N, Cin, H, W), jnp.float32)
    params = make_down_params(k_p, Cin, Cout)
    folded = fold_down_params(params, W // 2)

    out = jax.block_until_ready(jax.jit(down_forward)(x, folded))
    ref = jax.block_until_ready(down_reference(x, params))

    assert out.shape == (N, Cout, H // 2, W // 2), out.shape
    err = float(jnp.max(jnp.abs(out - ref)))
    assert jnp.allclose(out, ref, atol=5e-4, rtol=5e-4), err

    print("KERNEL_OK")
</pallas_src>

<mosaic_0001>
module attributes {stable_mosaic.version = 11 : i64} {
  func.func @_down_fused_kernel(%arg0: i32, %arg1: memref<1x8x32xf32, #tpu.memory_space<vmem>>, %arg2: memref<3x32x64xf32, #tpu.memory_space<vmem>>, %arg3: memref<1x64xf32, #tpu.memory_space<vmem>>, %arg4: memref<3x64x64xf32, #tpu.memory_space<vmem>>, %arg5: memref<1x64xf32, #tpu.memory_space<vmem>>, %arg6: memref<3x64x64xf32, #tpu.memory_space<vmem>>, %arg7: memref<1x64xf32, #tpu.memory_space<vmem>>, %arg8: memref<1x8x64xf32, #tpu.memory_space<vmem>>, %arg9: memref<10x32xf32, #tpu.memory_space<vmem>>, %arg10: memref<10x64xf32, #tpu.memory_space<vmem>>, %arg11: memref<10x64xf32, #tpu.memory_space<vmem>>) attributes {dimension_semantics = [#tpu.dimension_semantics<parallel>], iteration_bounds = array<i64: 2>, scalar_prefetch = 0 : i64, scratch_operands = 3 : i64, tpu.core_type = #tpu.core_type<tc>, window_params = [{transform_indices = @transform_0, window_bounds = array<i64: 1, 8, 32>}, {pipeline_mode = #tpu.pipeline_mode<synchronous>, transform_indices = @transform_1, window_bounds = array<i64: 3, 32, 64>}, {pipeline_mode = #tpu.pipeline_mode<synchronous>, transform_indices = @transform_2, window_bounds = array<i64: 1, 64>}, {pipeline_mode = #tpu.pipeline_mode<synchronous>, transform_indices = @transform_3, window_bounds = array<i64: 3, 64, 64>}, {pipeline_mode = #tpu.pipeline_mode<synchronous>, transform_indices = @transform_4, window_bounds = array<i64: 1, 64>}, {pipeline_mode = #tpu.pipeline_mode<synchronous>, transform_indices = @transform_5, window_bounds = array<i64: 3, 64, 64>}, {pipeline_mode = #tpu.pipeline_mode<synchronous>, transform_indices = @transform_6, window_bounds = array<i64: 1, 64>}, {transform_indices = @transform_7, window_bounds = array<i64: 1, 8, 64>}]} {
    %cst = arith.constant 0.000000e+00 : f32
    %0 = vector.broadcast %cst : f32 to vector<10x32xf32>
    %c0 = arith.constant 0 : index
    %c0_0 = arith.constant 0 : index
    %1 = vector.load %arg9[%c0, %c0_0] : memref<10x32xf32, #tpu.memory_space<vmem>>, vector<10x32xf32>
    tpu.vector_store %arg9[%c0, %c0_0], %0 {strides = array<i32>} : memref<10x32xf32, #tpu.memory_space<vmem>>, vector<10x32xf32>,
    %cst_1 = arith.constant 0.000000e+00 : f32
    %2 = vector.broadcast %cst_1 : f32 to vector<10x64xf32>
    %c0_2 = arith.constant 0 : index
    %c0_3 = arith.constant 0 : index
    %3 = vector.load %arg10[%c0_2, %c0_3] : memref<10x64xf32, #tpu.memory_space<vmem>>, vector<10x64xf32>
    tpu.vector_store %arg10[%c0_2, %c0_3], %2 {strides = array<i32>} : memref<10x64xf32, #tpu.memory_space<vmem>>, vector<10x64xf32>,
    %cst_4 = arith.constant 0.000000e+00 : f32
    %4 = vector.broadcast %cst_4 : f32 to vector<10x64xf32>
    %c0_5 = arith.constant 0 : index
    %c0_6 = arith.constant 0 : index
    %5 = vector.load %arg11[%c0_5, %c0_6] : memref<10x64xf32, #tpu.memory_space<vmem>>, vector<10x64xf32>
    tpu.vector_store %arg11[%c0_5, %c0_6], %4 {strides = array<i32>} : memref<10x64xf32, #tpu.memory_space<vmem>>, vector<10x64xf32>,
    %c0_7 = arith.constant 0 : index
    %c0_8 = arith.constant 0 : index
    %c0_9 = arith.constant 0 : index
    %6 = vector.load %arg1[%c0_7, %c0_8, %c0_9] : memref<1x8x32xf32, #tpu.memory_space<vmem>>, vector<1x8x32xf32>
    %7 = vector.shape_cast %6 : vector<1x8x32xf32> to vector<8x32xf32>
    %c1 = arith.constant 1 : index
    %c0_10 = arith.constant 0 : index
    %8 = vector.load %arg9[%c1, %c0_10] : memref<10x32xf32, #tpu.memory_space<vmem>>, vector<8x32xf32>
    tpu.vector_store %arg9[%c1, %c0_10], %7 {strides = array<i32>} : memref<10x32xf32, #tpu.memory_space<vmem>>, vector<8x32xf32>,
    %cst_11 = arith.constant 0.000000e+00 : f32
    %9 = vector.broadcast %cst_11 : f32 to vector<8x64xf32>
    %c0_12 = arith.constant 0 : index
    %c0_13 = arith.constant 0 : index
    %10 = vector.load %arg9[%c0_12, %c0_13] : memref<10x32xf32, #tpu.memory_space<vmem>>, vector<8x32xf32>
    %c0_14 = arith.constant 0 : index
    %c0_15 = arith.constant 0 : index
    %c0_16 = arith.constant 0 : index
    %11 = vector.load %arg2[%c0_14, %c0_15, %c0_16] : memref<3x32x64xf32, #tpu.memory_space<vmem>>, vector<1x32x64xf32>
    %12 = vector.shape_cast %11 : vector<1x32x64xf32> to vector<32x64xf32>
    %cst_17 = arith.constant dense<0.000000e+00> : vector<8x64xf32>
    %13 = tpu.matmul %10, %12, %cst_17 {dimension_numbers = #tpu.dot_dimension_numbers<[1], [0], [0], [1], [0, 0, 1, 1], [], []>} : vector<8x32xf32>, vector<32x64xf32>, vector<8x64xf32> -> vector<8x64xf32>
    %14 = arith.addf %9, %13 : vector<8x64xf32>
    %c1_18 = arith.constant 1 : index
    %c0_19 = arith.constant 0 : index
    %15 = vector.load %arg9[%c1_18, %c0_19] : memref<10x32xf32, #tpu.memory_space<vmem>>, vector<8x32xf32>
    %c1_20 = arith.constant 1 : index
    %c0_21 = arith.constant 0 : index
    %c0_22 = arith.constant 0 : index
    %16 = vector.load %arg2[%c1_20, %c0_21, %c0_22] : memref<3x32x64xf32, #tpu.memory_space<vmem>>, vector<1x32x64xf32>
    %17 = vector.shape_cast %16 : vector<1x32x64xf32> to vector<32x64xf32>
    %cst_23 = arith.constant dense<0.000000e+00> : vector<8x64xf32>
    %18 = tpu.matmul %15, %17, %cst_23 {dimension_numbers = #tpu.dot_dimension_numbers<[1], [0], [0], [1], [0, 0, 1, 1], [], []>} : vector<8x32xf32>, vector<32x64xf32>, vector<8x64xf32> -> vector<8x64xf32>
    %19 = arith.addf %14, %18 : vector<8x64xf32>
    %c2 = arith.constant 2 : index
    %c0_24 = arith.constant 0 : index
    %20 = vector.load %arg9[%c2, %c0_24] : memref<10x32xf32, #tpu.memory_space<vmem>>, vector<8x32xf32>
    %c2_25 = arith.constant 2 : index
    %c0_26 = arith.constant 0 : index
    %c0_27 = arith.constant 0 : index
    %21 = vector.load %arg2[%c2_25, %c0_26, %c0_27] : memref<3x32x64xf32, #tpu.memory_space<vmem>>, vector<1x32x64xf32>
    %22 = vector.shape_cast %21 : vector<1x32x64xf32> to vector<32x64xf32>
    %cst_28 = arith.constant dense<0.000000e+00> : vector<8x64xf32>
    %23 = tpu.matmul %20, %22, %cst_28 {dimension_numbers = #tpu.dot_dimension_numbers<[1], [0], [0], [1], [0, 0, 1, 1], [], []>} : vector<8x32xf32>, vector<32x64xf32>, vector<8x64xf32> -> vector<8x64xf32>
    %24 = arith.addf %19, %23 : vector<8x64xf32>
    %c0_29 = arith.constant 0 : index
    %c0_30 = arith.constant 0 : index
    %25 = vector.load %arg3[%c0_29, %c0_30] : memref<1x64xf32, #tpu.memory_space<vmem>>, vector<1x64xf32>
    %26 = vector.broadcast %25 : vector<1x64xf32> to vector<8x64xf32>
    %27 = arith.addf %24, %26 : vector<8x64xf32>
    %cst_31 = arith.constant 0.000000e+00 : f32
    %28 = vector.broadcast %cst_31 : f32 to vector<8x64xf32>
    %29 = arith.maximumf %27, %28 : vector<8x64xf32>
    %c1_32 = arith.constant 1 : index
    %c0_33 = arith.constant 0 : index
    %30 = vector.load %arg10[%c1_32, %c0_33] : memref<10x64xf32, #tpu.memory_space<vmem>>, vector<8x64xf32>
    tpu.vector_store %arg10[%c1_32, %c0_33], %29 {strides = array<i32>} : memref<10x64xf32, #tpu.memory_space<vmem>>, vector<8x64xf32>,
    %cst_34 = arith.constant 0.000000e+00 : f32
    %31 = vector.broadcast %cst_34 : f32 to vector<8x64xf32>
    %c0_35 = arith.constant 0 : index
    %c0_36 = arith.constant 0 : index
    %32 = vector.load %arg10[%c0_35, %c0_36] : memref<10x64xf32, #tpu.memory_space<vmem>>, vector<8x64xf32>
    %c0_37 = arith.constant 0 : index
    %c0_38 = arith.constant 0 : index
    %c0_39 = arith.constant 0 : index
    %33 = vector.load %arg4[%c0_37, %c0_38, %c0_39] : memref<3x64x64xf32, #tpu.memory_space<vmem>>, vector<1x64x64xf32>
    %34 = vector.shape_cast %33 : vector<1x64x64xf32> to vector<64x64xf32>
    %cst_40 = arith.constant dense<0.000000e+00> : vector<8x64xf32>
    %35 = tpu.matmul %32, %34, %cst_40 {dimension_numbers = #tpu.dot_dimension_numbers<[1], [0], [0], [1], [0, 0, 1, 1], [], []>} : vector<8x64xf32>, vector<64x64xf32>, vector<8x64xf32> -> vector<8x64xf32>
    %36 = arith.addf %31, %35 : vector<8x64xf32>
    %c1_41 = arith.constant 1 : index
    %c0_42 = arith.constant 0 : index
    %37 = vector.load %arg10[%c1_41, %c0_42] : memref<10x64xf32, #tpu.memory_space<vmem>>, vector<8x64xf32>
    %c1_43 = arith.constant 1 : index
    %c0_44 = arith.constant 0 : index
    %c0_45 = arith.constant 0 : index
    %38 = vector.load %arg4[%c1_43, %c0_44, %c0_45] : memref<3x64x64xf32, #tpu.memory_space<vmem>>, vector<1x64x64xf32>
    %39 = vector.shape_cast %38 : vector<1x64x64xf32> to vector<64x64xf32>
    %cst_46 = arith.constant dense<0.000000e+00> : vector<8x64xf32>
    %40 = tpu.matmul %37, %39, %cst_46 {dimension_numbers = #tpu.dot_dimension_numbers<[1], [0], [0], [1], [0, 0, 1, 1], [], []>} : vector<8x64xf32>, vector<64x64xf32>, vector<8x64xf32> -> vector<8x64xf32>
    %41 = arith.addf %36, %40 : vector<8x64xf32>
    %c2_47 = arith.constant 2 : index
    %c0_48 = arith.constant 0 : index
    %42 = vector.load %arg10[%c2_47, %c0_48] : memref<10x64xf32, #tpu.memory_space<vmem>>, vector<8x64xf32>
    %c2_49 = arith.constant 2 : index
    %c0_50 = arith.constant 0 : index
    %c0_51 = arith.constant 0 : index
    %43 = vector.load %arg4[%c2_49, %c0_50, %c0_51] : memref<3x64x64xf32, #tpu.memory_space<vmem>>, vector<1x64x64xf32>
    %44 = vector.shape_cast %43 : vector<1x64x64xf32> to vector<64x64xf32>
    %cst_52 = arith.constant dense<0.000000e+00> : vector<8x64xf32>
    %45 = tpu.matmul %42, %44, %cst_52 {dimension_numbers = #tpu.dot_dimension_numbers<[1], [0], [0], [1], [0, 0, 1, 1], [], []>} : vector<8x64xf32>, vector<64x64xf32>, vector<8x64xf32> -> vector<8x64xf32>
    %46 = arith.addf %41, %45 : vector<8x64xf32>
    %c0_53 = arith.constant 0 : index
    %c0_54 = arith.constant 0 : index
    %47 = vector.load %arg5[%c0_53, %c0_54] : memref<1x64xf32, #tpu.memory_space<vmem>>, vector<1x64xf32>
    %48 = vector.broadcast %47 : vector<1x64xf32> to vector<8x64xf32>
    %49 = arith.addf %46, %48 : vector<8x64xf32>
    %cst_55 = arith.constant 0.000000e+00 : f32
    %50 = vector.broadcast %cst_55 : f32 to vector<8x64xf32>
    %51 = arith.maximumf %49, %50 : vector<8x64xf32>
    %c1_56 = arith.constant 1 : index
    %c0_57 = arith.constant 0 : index
    %52 = vector.load %arg11[%c1_56, %c0_57] : memref<10x64xf32, #tpu.memory_space<vmem>>, vector<8x64xf32>
    tpu.vector_store %arg11[%c1_56, %c0_57], %51 {strides = array<i32>} : memref<10x64xf32, #tpu.memory_space<vmem>>, vector<8x64xf32>,
    %cst_58 = arith.constant 0.000000e+00 : f32
    %53 = vector.broadcast %cst_58 : f32 to vector<8x64xf32>
    %c0_59 = arith.constant 0 : index
    %c0_60 = arith.constant 0 : index
    %54 = vector.load %arg11[%c0_59, %c0_60] : memref<10x64xf32, #tpu.memory_space<vmem>>, vector<8x64xf32>
    %c0_61 = arith.constant 0 : index
    %c0_62 = arith.constant 0 : index
    %c0_63 = arith.constant 0 : index
    %55 = vector.load %arg6[%c0_61, %c0_62, %c0_63] : memref<3x64x64xf32, #tpu.memory_space<vmem>>, vector<1x64x64xf32>
    %56 = vector.shape_cast %55 : vector<1x64x64xf32> to vector<64x64xf32>
    %cst_64 = arith.constant dense<0.000000e+00> : vector<8x64xf32>
    %57 = tpu.matmul %54, %56, %cst_64 {dimension_numbers = #tpu.dot_dimension_numbers<[1], [0], [0], [1], [0, 0, 1, 1], [], []>} : vector<8x64xf32>, vector<64x64xf32>, vector<8x64xf32> -> vector<8x64xf32>
    %58 = arith.addf %53, %57 : vector<8x64xf32>
    %c1_65 = arith.constant 1 : index
    %c0_66 = arith.constant 0 : index
    %59 = vector.load %arg11[%c1_65, %c0_66] : memref<10x64xf32, #tpu.memory_space<vmem>>, vector<8x64xf32>
    %c1_67 = arith.constant 1 : index
    %c0_68 = arith.constant 0 : index
    %c0_69 = arith.constant 0 : index
    %60 = vector.load %arg6[%c1_67, %c0_68, %c0_69] : memref<3x64x64xf32, #tpu.memory_space<vmem>>, vector<1x64x64xf32>
    %61 = vector.shape_cast %60 : vector<1x64x64xf32> to vector<64x64xf32>
    %cst_70 = arith.constant dense<0.000000e+00> : vector<8x64xf32>
    %62 = tpu.matmul %59, %61, %cst_70 {dimension_numbers = #tpu.dot_dimension_numbers<[1], [0], [0], [1], [0, 0, 1, 1], [], []>} : vector<8x64xf32>, vector<64x64xf32>, vector<8x64xf32> -> vector<8x64xf32>
    %63 = arith.addf %58, %62 : vector<8x64xf32>
    %c2_71 = arith.constant 2 : index
    %c0_72 = arith.constant 0 : index
    %64 = vector.load %arg11[%c2_71, %c0_72] : memref<10x64xf32, #tpu.memory_space<vmem>>, vector<8x64xf32>
    %c2_73 = arith.constant 2 : index
    %c0_74 = arith.constant 0 : index
    %c0_75 = arith.constant 0 : index
    %65 = vector.load %arg6[%c2_73, %c0_74, %c0_75] : memref<3x64x64xf32, #tpu.memory_space<vmem>>, vector<1x64x64xf32>
    %66 = vector.shape_cast %65 : vector<1x64x64xf32> to vector<64x64xf32>
    %cst_76 = arith.constant dense<0.000000e+00> : vector<8x64xf32>
    %67 = tpu.matmul %64, %66, %cst_76 {dimension_numbers = #tpu.dot_dimension_numbers<[1], [0], [0], [1], [0, 0, 1, 1], [], []>} : vector<8x64xf32>, vector<64x64xf32>, vector<8x64xf32> -> vector<8x64xf32>
    %68 = arith.addf %63, %67 : vector<8x64xf32>
    %c0_77 = arith.constant 0 : index
    %c0_78 = arith.constant 0 : index
    %69 = vector.load %arg7[%c0_77, %c0_78] : memref<1x64xf32, #tpu.memory_space<vmem>>, vector<1x64xf32>
    %70 = vector.broadcast %69 : vector<1x64xf32> to vector<8x64xf32>
    %71 = arith.addf %68, %70 : vector<8x64xf32>
    %72 = arith.addf %71, %29 : vector<8x64xf32>
    %cst_79 = arith.constant 0.000000e+00 : f32
    %73 = vector.broadcast %cst_79 : f32 to vector<8x64xf32>
    %74 = arith.maximumf %72, %73 : vector<8x64xf32>
    %c0_80 = arith.constant 0 : index
    %c0_81 = arith.constant 0 : index
    %c0_82 = arith.constant 0 : index
    %75 = vector.load %arg8[%c0_80, %c0_81, %c0_82] : memref<1x8x64xf32, #tpu.memory_space<vmem>>, vector<1x8x64xf32>
    %76 = vector.shape_cast %75 : vector<1x8x64xf32> to vector<8x64xf32>
    %77 = vector.shape_cast %74 : vector<8x64xf32> to vector<1x8x64xf32>
    tpu.vector_store %arg8[%c0_80, %c0_81, %c0_82], %77 {strides = array<i32>} : memref<1x8x64xf32, #tpu.memory_space<vmem>>, vector<1x8x64xf32>,
    return
  }
  func.func @transform_0(%arg0: i32) -> (i32, i32, i32) {
    %c0_i32 = arith.constant 0 : i32
    %c0_i32_0 = arith.constant 0 : i32
    %c0_i32_1 = arith.constant 0 : i32
    return %arg0, %c0_i32, %c0_i32_0 : i32, i32, i32
  }
  func.func @transform_1(%arg0: i32) -> (i32, i32, i32) {
    %c0_i32 = arith.constant 0 : i32
    %c0_i32_0 = arith.constant 0 : i32
    %c0_i32_1 = arith.constant 0 : i32
    %c0_i32_2 = arith.constant 0 : i32
    return %c0_i32, %c0_i32_0, %c0_i32_1 : i32, i32, i32
  }
  func.func @transform_2(%arg0: i32) -> (i32, i32) {
    %c0_i32 = arith.constant 0 : i32
    %c0_i32_0 = arith.constant 0 : i32
    %c0_i32_1 = arith.constant 0 : i32
    return %c0_i32, %c0_i32_0 : i32, i32
  }
  func.func @transform_3(%arg0: i32) -> (i32, i32, i32) {
    %c0_i32 = arith.constant 0 : i32
    %c0_i32_0 = arith.constant 0 : i32
    %c0_i32_1 = arith.constant 0 : i32
    %c0_i32_2 = arith.constant 0 : i32
    return %c0_i32, %c0_i32_0, %c0_i32_1 : i32, i32, i32
  }
  func.func @transform_4(%arg0: i32) -> (i32, i32) {
    %c0_i32 = arith.constant 0 : i32
    %c0_i32_0 = arith.constant 0 : i32
    %c0_i32_1 = arith.constant 0 : i32
    return %c0_i32, %c0_i32_0 : i32, i32
  }
  func.func @transform_5(%arg0: i32) -> (i32, i32, i32) {
    %c0_i32 = arith.constant 0 : i32
    %c0_i32_0 = arith.constant 0 : i32
    %c0_i32_1 = arith.constant 0 : i32
    %c0_i32_2 = arith.constant 0 : i32
    return %c0_i32, %c0_i32_0, %c0_i32_1 : i32, i32, i32
  }
  func.func @transform_6(%arg0: i32) -> (i32, i32) {
    %c0_i32 = arith.constant 0 : i32
    %c0_i32_0 = arith.constant 0 : i32
    %c0_i32_1 = arith.constant 0 : i32
    return %c0_i32, %c0_i32_0 : i32, i32
  }
  func.func @transform_7(%arg0: i32) -> (i32, i32, i32) {
    %c0_i32 = arith.constant 0 : i32
    %c0_i32_0 = arith.constant 0 : i32
    %c0_i32_1 = arith.constant 0 : i32
    return %arg0, %c0_i32, %c0_i32_0 : i32, i32, i32
  }
}

</mosaic_0001>

<bundles_post_ra>
// kernel: down_forward.1
= control target key start
LH: loop header
LB: loop body
LE: loop exit
PB: predicated region body
PF: predicated region fallthrough
CT: control target
= control target key end

     0   :  { %s765_s24 = smov 0   ;;  %s1001_s0 = inlined_call_operand.vmem [shape: f32[2,8,32], index: 0, kind: input, shape index: {}]   ;;  %s1002_s1 = inlined_call_operand.vmem [shape: f32[3,32,64], index: 1, kind: input, shape index: {}]   ;;  %s1003_s2 = inlined_call_operand.vmem [shape: f32[1,64], index: 2, kind: input, shape index: {}]   ;;  %s1004_s3 = inlined_call_operand.vmem [shape: f32[3,64,64], index: 3, kind: input, shape index: {}]   ;;  %s1005_s4 = inlined_call_operand.vmem [shape: f32[1,64], index: 4, kind: input, shape index: {}]   ;;  %s1006_s5 = inlined_call_operand.vmem [shape: f32[3,64,64], index: 5, kind: input, shape index: {}]   ;;  %s1007_s6 = inlined_call_operand.vmem [shape: f32[1,64], index: 6, kind: input, shape index: {}]   ;;  %s1008_s7 = inlined_call_operand.vmem [shape: f32[2,8,64], index: 7, kind: output, shape index: {}]  }
   0x1 LB: > { %s646_s25 = sadd.s32 4294967295, %s722_s24   ;;  %p650_p0 = scmp.ge.s32.totalorder %s722_s24, 1  ;;  %s722_s24 = sphi %s765_s24, %s17_s24  }
   0x2   : > { %p236_p1 = scmp.lt.s32.totalorder %s722_s24, 3 }
   0x4   : > { %p237_p2 = pnand %p650_p0, %p236_p1 }
   0x5   : > { %p266_p3 = scmp.lt.s32.totalorder (!%p237_p2), %s646_s25, 1 }
   0x6   : > { %240 = sbr.rel (%p237_p2) target bundleno = 467 (0x1d3), region = 48 }
   0xb   : > { %v656_v0 = vld [vmem:[%s1002_s1 + $0x38] sm:$0xff]  ;;  %v655_v1 = vld [vmem:[%s1002_s1 + $0x30] sm:$0xff]  ;;  %vm274_vm0 = vcmask 261120   ;;  %v724_v4 = vmov 0.0   ;;  %vm276_vm1 = vcmask 254976   ;;  %v654_v5 = vld [vmem:[%s1002_s1 + $0x28] sm:$0xff] }
   0xc   : > { %312 = vmatpush.msra.mxu1 %v656_v0  ;;  %v662_v2 = vld [vmem:[%s1002_s1 + $0x58] sm:$0xff]  ;;  %v661_v3 = vld [vmem:[%s1002_s1 + $0x50] sm:$0xff]  ;;  %275 = vst.msk [vmem:[#allocation2] sm:$0xff] %vm274_vm0, %v724_v4  ;;  %s1010_s25 = smov (!%p266_p3, %s646_s25), 1  ;;  %v660_v6 = vld [vmem:[%s1002_s1 + $0x48] sm:$0xff]  ;;  %vm278_vm2 = vcmask 523264  }
   0xd   : > { %364 = vmatpush.msra.mxu2 %v662_v2  ;;  %277 = vst.msk [vmem:[#allocation2 + $0x8] sm:$0x3] %vm276_vm1, %v724_v4  ;;  %v653_v7 = vld [vmem:[%s1002_s1 + $0x20] sm:$0xff]  ;;  %s651_s17 = sshll.u32 %s1010_s25, 3  ;;  %v290_v8 = vld [vmem:[%s1002_s1 + $0x18] sm:$0xff]  ;;  %v289_v11 = vld [vmem:[%s1002_s1 + $0x10] sm:$0xff] }
   0xe   : > { %313 = vmatpush.msra.mxu1 %v655_v1  ;;  %s269_s20 = scalar_lea.vmem %s1001_s0, %s651_s17  ;;  %v659_v9 = vld [vmem:[%s1002_s1 + $0x40] sm:$0xff]  ;;  %v288_v12 = vld [vmem:[%s1002_s1 + $0x8] sm:$0xff]  ;;  %vm280_vm3 = vcmask 517120   ;;  %v671_v17 = vld [vmem:[%s1004_s3 + $0x78] sm:$0xff]  ;;  %279 = vst.msk [vmem:[#allocation3] sm:$0xff] %vm278_vm2, %v724_v4  ;;  %s273_s14 = scalar_lea.vmem %s1008_s7, %s651_s17 }
   0xf   : > { %365 = vmatpush.msra.mxu2 %v661_v3  ;;  %v284_v10 = vld [vmem:[%s269_s20] sm:$0xff]  ;;  %v388_v18 = vld [vmem:[%s1004_s3 + $0x38] sm:$0xff]  ;;  %410 = vmatpush.msra.mxu3 %v671_v17  ;;  %281 = vst.msk [vmem:[#allocation3 + $0x8] sm:$0x3] %vm280_vm3, %v724_v4  ;;  %v670_v20 = vld [vmem:[%s1004_s3 + $0x70] sm:$0xff] }
  0x10   : > { %314 = vmatpush.msra.mxu1 %v654_v5  ;;  %285 = vst.msk [vmem:[#allocation2 + $0x1] sm:$0xff] %vm274_vm0, %v284_v10  ;;  %v287_v13 = vld [vmem:[%s1002_s1] sm:$0xff]  ;;  %v681_v19 = vld [vmem:[%s1004_s3 + $0xb8] sm:$0xff]  ;;  %433 = vmatpush.msra.mxu0 %v388_v18  ;;  %v387_v21 = vld [vmem:[%s1004_s3 + $0x30] sm:$0xff] }
  0x11   : > { %366 = vmatpush.msra.mxu2 %v660_v6  ;;  %282 = vst.msk [vmem:[#allocation4] sm:$0xff] %vm278_vm2, %v724_v4  ;;  %411 = vmatpush.msra.mxu3 %v670_v20  ;;  %v680_v22 = vld [vmem:[%s1004_s3 + $0xb0] sm:$0xff]  ;;  %v669_v23 = vld [vmem:[%s1004_s3 + $0x68] sm:$0xff]  ;;  %v668_v26 = vld [vmem:[%s1004_s3 + $0x60] sm:$0xff] }
  0x12   : > { %315 = vmatpush.msra.mxu1 %v653_v7  ;;  %434 = vmatpush.msra.mxu0 %v387_v21  ;;  %283 = vst.msk [vmem:[#allocation4 + $0x8] sm:$0x3] %vm280_vm3, %v724_v4  ;;  %v386_v24 = vld [vmem:[%s1004_s3 + $0x28] sm:$0xff]  ;;  %v385_v27 = vld [vmem:[%s1004_s3 + $0x20] sm:$0xff]  ;;  %v667_v29 = vld [vmem:[%s1004_s3 + $0x58] sm:$0xff] }
  0x13   : > { %367 = vmatpush.msra.mxu2 %v659_v9  ;;  %v679_v25 = vld [vmem:[%s1004_s3 + $0xa8] sm:$0xff]  ;;  %412 = vmatpush.msra.mxu3 %v669_v23  ;;  %v678_v28 = vld [vmem:[%s1004_s3 + $0xa0] sm:$0xff]  ;;  %v384_v30 = vld [vmem:[%s1004_s3 + $0x18] sm:$0xff] }
  0x14   : > { %335 = vmatpush.msrb.mxu1 %v290_v8  ;;  %435 = vmatpush.msra.mxu0 %v386_v24  ;;  %v677_v31 = vld [vmem:[%s1004_s3 + $0x98] sm:$0xff]  ;;  %v666_v32 = vld [vmem:[%s1004_s3 + $0x50] sm:$0xff]  ;;  %v665_v35 = vld [vmem:[%s1004_s3 + $0x48] sm:$0xff] }
  0x15   : > { %413 = vmatpush.msra.mxu3 %v668_v26  ;;  %v383_v33 = vld [vmem:[%s1004_s3 + $0x10] sm:$0xff]  ;;  %v382_v36 = vld [vmem:[%s1004_s3 + $0x8] sm:$0xff]  ;;  %v664_v38 = vld [vmem:[%s1004_s3 + $0x40] sm:$0xff] }
  0x16   : > { %336 = vmatpush.msrb.mxu1 %v289_v11  ;;  %436 = vmatpush.msra.mxu0 %v385_v27  ;;  %v676_v34 = vld [vmem:[%s1004_s3 + $0x90] sm:$0xff]  ;;  %v675_v37 = vld [vmem:[%s1004_s3 + $0x88] sm:$0xff]  ;;  %v381_v39 = vld [vmem:[%s1004_s3] sm:$0xff] }
  0x17   : > { %v291_v14 = vld [vmem:[#allocation2 + $0x1] sm:$0xff]  ;;  %414 = vmatpush.msra.mxu3 %v667_v29  ;;  %v713_v45 = vld [vmem:[%s1003_s2] ss:$0 sm:$0xff]  ;;  %v690_v52 = vld [vmem:[%s1006_s5 + $0x78] sm:$0xff] }
  0x18   : > { %337 = vmatpush.msrb.mxu1 %v288_v12  ;;  %v343_v15 = vld [vmem:[#allocation2 + $0x2] sm:$0xff]  ;;  %437 = vmatpush.msra.mxu0 %v384_v30  ;;  %v494_v53 = vld [vmem:[%s1006_s5 + $0x38] sm:$0xff]  ;;  %v689_v55 = vld [vmem:[%s1006_s5 + $0x70] sm:$0xff] }
  0x19   : > { %657 = vmatmul.msk.f32.vlgmr.msra.gmra.mxu1 %vm274_vm0, %v291_v14  ;;  %663 = vmatmul.msk.f32.vlgmr.msra.gmra.mxu2 %vm274_vm0, %v343_v15  ;;  %v286_v16 = vld [vmem:[#allocation2] sm:$0xff]  ;;  %v700_v54 = vld [vmem:[%s1006_s5 + $0xb8] sm:$0xff]  ;;  %v493_v56 = vld [vmem:[%s1006_s5 + $0x30] sm:$0xff] }
  0x1a   : > { %338 = vmatpush.msrb.mxu1 %v287_v13  ;;  %415 = vmatpush.msra.mxu3 %v666_v32  ;;  %v674_v40 = vld [vmem:[%s1004_s3 + $0x80] sm:$0xff]  ;;  %v699_v57 = vld [vmem:[%s1006_s5 + $0xb0] sm:$0xff]  ;;  %v688_v58 = vld [vmem:[%s1006_s5 + $0x68] sm:$0xff] }
  0x1b   : > { %438 = vmatpush.msra.mxu0 %v383_v33  ;;  %516 = vmatpush.msrb.mxu2 %v690_v52  ;;  %v492_v59 = vld [vmem:[%s1006_s5 + $0x28] sm:$0xff]  ;;  %v687_v61 = vld [vmem:[%s1006_s5 + $0x60] sm:$0xff]  ;;  %v686_v0 = vld [vmem:[%s1006_s5 + $0x58] sm:$0xff] }
  0x1c   : > { %466 = vmatpush.msra.mxu1 %v681_v19  ;;  %416 = vmatpush.msra.mxu3 %v665_v35  ;;  %v698_v60 = vld [vmem:[%s1006_s5 + $0xa8] sm:$0xff]  ;;  %v491_v62 = vld [vmem:[%s1006_s5 + $0x20] sm:$0xff]  ;;  %v490_v1 = vld [vmem:[%s1006_s5 + $0x18] sm:$0xff] }
  0x1d   : > { %439 = vmatpush.msra.mxu0 %v382_v36  ;;  %517 = vmatpush.msrb.mxu2 %v689_v55  ;;  %v697_v63 = vld [vmem:[%s1006_s5 + $0xa0] sm:$0xff]  ;;  %v696_v2 = vld [vmem:[%s1006_s5 + $0x98] sm:$0xff]  ;;  %v685_v3 = vld [vmem:[%s1006_s5 + $0x50] sm:$0xff] }
  0x1e   : > { %467 = vmatpush.msra.mxu1 %v680_v22  ;;  %417 = vmatpush.msra.mxu3 %v664_v38  ;;  %v489_v4 = vld [vmem:[%s1006_s5 + $0x10] sm:$0xff]  ;;  %v684_v6 = vld [vmem:[%s1006_s5 + $0x48] sm:$0xff]  ;;  %v683_v9 = vld [vmem:[%s1006_s5 + $0x40] sm:$0xff] }
  0x1f   : > { %440 = vmatpush.msra.mxu0 %v381_v39  ;;  %518 = vmatpush.msrb.mxu2 %v688_v58  ;;  %v695_v5 = vld [vmem:[%s1006_s5 + $0x90] sm:$0xff]  ;;  %v488_v7 = vld [vmem:[%s1006_s5 + $0x8] sm:$0xff]  ;;  %v487_v10 = vld [vmem:[%s1006_s5] sm:$0xff] }
  0x20   : > { %468 = vmatpush.msra.mxu1 %v679_v25  ;;  %539 = vmatpush.msrb.mxu3 %v494_v53  ;;  %v694_v8 = vld [vmem:[%s1006_s5 + $0x88] sm:$0xff]  ;;  %v693_v11 = vld [vmem:[%s1006_s5 + $0x80] sm:$0xff] }
  0x21   : > { %658 = vmatmul.msk.f32.vlgmr.msrb.gmra.mxu1 %vm274_vm0, %v286_v16  ;;  %572 = vmatpush.msrb.mxu0 %v700_v54  ;;  %v714_v15 = vld [vmem:[%s1005_s4] ss:$0 sm:$0xff] }
  0x22   : > { %469 = vmatpush.msra.mxu1 %v678_v28  ;;  %540 = vmatpush.msrb.mxu3 %v493_v56  ;;  %v715_v26 = vld [vmem:[%s1007_s6] ss:$0 sm:$0xff] }
  0x23   : > { %573 = vmatpush.msrb.mxu0 %v699_v57  ;;  %519 = vmatpush.msrb.mxu2 %v687_v61 }
  0x24   : > { %470 = vmatpush.msra.mxu1 %v677_v31  ;;  %541 = vmatpush.msrb.mxu3 %v492_v59 }
  0x25   : > { %574 = vmatpush.msrb.mxu0 %v698_v60  ;;  %520 = vmatpush.msrb.mxu2 %v686_v0 }
  0x26   : > { %471 = vmatpush.msra.mxu1 %v676_v34  ;;  %542 = vmatpush.msrb.mxu3 %v491_v62 }
  0x27   : > { %575 = vmatpush.msrb.mxu0 %v697_v63  ;;  %521 = vmatpush.msrb.mxu2 %v685_v3 }
  0x28   : > { %472 = vmatpush.msra.mxu1 %v675_v37  ;;  %543 = vmatpush.msrb.mxu3 %v490_v1 }
  0x29   : > { %576 = vmatpush.msrb.mxu0 %v696_v2  ;;  %522 = vmatpush.msrb.mxu2 %v684_v6 }
  0x2a   : > { %473 = vmatpush.msra.mxu1 %v674_v40  ;;  %544 = vmatpush.msrb.mxu3 %v489_v4 }
  0x2b   : > { %577 = vmatpush.msrb.mxu0 %v695_v5  ;;  %523 = vmatpush.msrb.mxu2 %v683_v9 }
  0x2c   : > { %545 = vmatpush.msrb.mxu3 %v488_v7 }
  0x2d   : > { %578 = vmatpush.msrb.mxu0 %v694_v8 }
  0x2e   : > { %546 = vmatpush.msrb.mxu3 %v487_v10 }
  0x2f   : > { %579 = vmatpush.msrb.mxu0 %v693_v11 }
  0x96   : > { %v317_v41 = vpop.f32.mrf.mxu1 }
  0x9c   : > { %v369_v43 = vpop.f32.mrf.mxu2 }
  0x9e   : > { %v340_v42 = vpop.f32.mrf.mxu1 }
  0x9f   : > { %v341_v44 = vadd.f32 %v340_v42, %v317_v41 }
  0xa1   : > { %v372_v46 = vadd.f32 %v369_v43, %v341_v44 }
  0xa3   : > { %v899_v47 = vadd.f32 %v713_v45, %v372_v46 }
  0xa5   : > { %v378_v48 = vmax.f32 %v899_v47, 0.0 }
  0xa7   : > { %379 = vst.msk [vmem:[#allocation3 + $0x1] sm:$0xff] %vm278_vm2, %v378_v48 }
  0xae   : > { %v389_v49 = vld [vmem:[#allocation3 + $0x1] sm:$0xff] }
  0xaf   : > { %v380_v50 = vld [vmem:[#allocation3] sm:$0xff]  ;;  %672 = vmatmul.msk.f32.vlgmr.msra.gmra.mxu3 %vm278_vm2, %v389_v49 }
  0xb0   : > { %v445_v51 = vld [vmem:[#allocation3 + $0x2] sm:$0xff]  ;;  %673 = vmatmul.msk.f32.vlgmr.msra.gmra.mxu0 %vm278_vm2, %v380_v50 }
  0xb1   : > { %682 = vmatmul.msk.f32.vlgmr.msra.gmra.mxu1 %vm278_vm2, %v445_v51 }
 0x12d   : > { %v442_v12 = vpop.f32.mrf.mxu0 }
 0x12e   : > { %v475_v16 = vpop.f32.mrf.mxu1 }
 0x132   : > { %v419_v13 = vpop.f32.mrf.mxu3 }
 0x133   : > { %v443_v14 = vadd.f32 %v442_v12, %v419_v13 }
 0x135   : > { %v478_v17 = vadd.f32 %v475_v16, %v443_v14 }
 0x137   : > { %v483_v18 = vadd.f32 %v714_v15, %v478_v17 }
 0x139   : > { %v484_v19 = vmax.f32 %v483_v18, 0.0 }
 0x13b   : > { %485 = vst.msk [vmem:[#allocation4 + $0x1] sm:$0xff] %vm278_vm2, %v484_v19 }
 0x142   : > { %v495_v20 = vld [vmem:[#allocation4 + $0x1] sm:$0xff] }
 0x143   : > { %v486_v21 = vld [vmem:[#allocation4] sm:$0xff]  ;;  %691 = vmatmul.msk.f32.vlgmr.msrb.gmra.mxu2 %vm278_vm2, %v495_v20 }
 0x144   : > { %v551_v22 = vld [vmem:[#allocation4 + $0x2] sm:$0xff]  ;;  %692 = vmatmul.msk.f32.vlgmr.msrb.gmra.mxu3 %vm278_vm2, %v486_v21 }
 0x145   : > { %701 = vmatmul.msk.f32.vlgmr.msrb.gmra.mxu0 %vm278_vm2, %v551_v22 }
 0x1c2   : > { %v581_v27 = vpop.f32.mrf.mxu0 }
 0x1c6   : > { %v525_v23 = vpop.f32.mrf.mxu2 }
 0x1c7   : > { %v548_v24 = vpop.f32.mrf.mxu3 }
 0x1c8   : > { %v549_v25 = vadd.f32 %v548_v24, %v525_v23 }
 0x1ca   : > { %v584_v28 = vadd.f32 %v581_v27, %v549_v25 }
 0x1cc   : > { %v589_v29 = vadd.f32 %v715_v26, %v584_v28 }
 0x1ce   : > { %v590_v30 = vadd.f32 %v589_v29, %v378_v48 }
 0x1d0   : > { %v591_v31 = vmax.f32 %v590_v30, 0.0 }
 0x1d2   : > { %592 = vst.msk [vmem:[%s273_s14] sm:$0xff] %vm278_vm2, %v591_v31 }
 0x1d3 PF: > { %s17_s24 = sadd.s32 1, %s722_s24  }
 0x1d4   : > { %p14_p4 = scmp.ge.s32.totalorder %s17_s24, 4  }
 0x1d6   :  { %16 = sbr.rel (!%p14_p4) target bundleno = 1 (0x1), region = 84 }

</bundles_post_ra>
